<compile_context>
chip_gen: v6e
topology: v6e:2x2x1
jax: 0.10.0
libtpu: 0.0.40
codegen_flags: <defaults>
</compile_context>

<pallas_src>
import functools

import jax
import jax.numpy as jnp
from jax import lax
from jax.experimental import pallas as pl
from jax.experimental.pallas import tpu as pltpu

_MAX_LANE_TILE = 4096


def _round_up(v, m):
    return (v + m - 1) // m * m


def _hw_budgets():
    """Return (vmem_limit_bytes, pass1_tile_bytes, pass2_tile_bytes)."""
    vmem_limit = 48 * 1024 * 1024   # > 32 MiB scoped default, < 64 MiB v7x phys
    p1_bytes = 16 * 1024 * 1024     # pass 1: only x double-buffered (~2x tile)
    p2_bytes = 8 * 1024 * 1024      # pass 2: x in + out, each double-buffered
    try:
        phys = int(pltpu.get_tpu_info().vmem_capacity_bytes)
    except Exception:  # pragma: no cover - conservative fallback
        phys = 0
    if phys >= 100 * 1024 * 1024:
        # 128 MiB-class chips (v5e / v6e): bigger slabs, higher scoped limit.
        # Even if a v7x reported aggregate VMEM here, live usage stays < 64 MiB.
        vmem_limit = 88 * 1024 * 1024
        p1_bytes = 24 * 1024 * 1024
        p2_bytes = 12 * 1024 * 1024
    return vmem_limit, p1_bytes, p2_bytes


def _pick_tiles(n_rows, n_cols, itemsize, tile_bytes, min_row_blocks=2):
    """Pick (tr, tc) for a [n_rows, n_cols] stream of elements of `itemsize`."""
    # Packed-sublane row multiple: 8 for f32, 16 for bf16, 32 for int8/fp8.
    sub = max(8, 32 // max(1, itemsize))
    # Lane tile: full flattened spatial when modest (lane-dense, unmasked
    # stores), otherwise a large multiple of 128.
    tc = n_cols if n_cols <= _MAX_LANE_TILE else _MAX_LANE_TILE
    rows_budget = max(sub, (tile_bytes // (tc * itemsize)) // sub * sub)
    tr = min(_round_up(n_rows, sub), rows_budget)
    if min_row_blocks > 1 and n_rows >= min_row_blocks * sub:
        # Guarantee >= min_row_blocks blocks along the parallel row axis so a
        # 2-TensorCore chip (v7x) never sees a collapsed (1, ...) grid.
        tr = min(tr, _round_up(pl.cdiv(n_rows, min_row_blocks), sub))
    if tr >= n_rows:
        tr = n_rows   # full extent is always a legal block dim
    return tr, tc


# ----------------------------------------------------------------------------
# Pass 1: per-row sum and sum-of-squares over x viewed as [N*C, H*W].
# ----------------------------------------------------------------------------
def _row_stats_kernel(x_ref, s1_ref, s2_ref, *, n_cols, tc):
    k = pl.program_id(1)

    @pl.when(k == 0)
    def _():
        s1_ref[...] = jnp.zeros_like(s1_ref)
        s2_ref[...] = jnp.zeros_like(s2_ref)

    def _accumulate(x):
        s1_ref[...] += jnp.sum(x, axis=1, keepdims=True)
        s2_ref[...] += jnp.sum(x * x, axis=1, keepdims=True)

    # Ragged last column tile: padded lanes hold unspecified data. The mask is
    # traced only for the last column step (pl.when) so the hot path stays
    # purely HBM-bound. Out-of-bounds *rows* are confined to output rows that
    # Pallas drops on writeback, so no row mask is needed.
    if n_cols % tc != 0:
        last = pl.num_programs(1) - 1

        @pl.when(k != last)
        def _():
            _accumulate(x_ref[...].astype(jnp.float32))

        @pl.when(k == last)
        def _():
            x = x_ref[...].astype(jnp.float32)
            col_ids = lax.broadcasted_iota(jnp.int32, x.shape, 1) + k * tc
            _accumulate(jnp.where(col_ids < n_cols, x, 0.0))
    else:
        _accumulate(x_ref[...].astype(jnp.float32))


def _row_stats(xr, tr, tc, vmem_limit):
    R, HW = xr.shape
    kernel = functools.partial(_row_stats_kernel, n_cols=HW, tc=tc)
    return pl.pallas_call(
        kernel,
        out_shape=(jax.ShapeDtypeStruct((R, 1), jnp.float32),
                   jax.ShapeDtypeStruct((R, 1), jnp.float32)),
        grid_spec=pltpu.PrefetchScalarGridSpec(
            num_scalar_prefetch=0,
            grid=(pl.cdiv(R, tr), pl.cdiv(HW, tc)),
            in_specs=[pl.BlockSpec((tr, tc), lambda i, k: (i, k))],
            out_specs=[pl.BlockSpec((tr, 1), lambda i, k: (i, 0)),
                       pl.BlockSpec((tr, 1), lambda i, k: (i, 0))],
        ),
        compiler_params=pltpu.CompilerParams(
            dimension_semantics=("parallel", "arbitrary"),
            vmem_limit_bytes=vmem_limit),
        cost_estimate=pl.CostEstimate(
            flops=3 * R * HW,
            transcendentals=0,
            bytes_accessed=R * HW * xr.dtype.itemsize + 2 * R * 4),
    )(xr)


# ----------------------------------------------------------------------------
# Pass 2: z[r, :] = scale[r] * x[r, :] + shift[r]   (fused BN+GN epilogue)
# ----------------------------------------------------------------------------
def _apply_affine_kernel(x_ref, scale_ref, shift_ref, o_ref):
    x = x_ref[...].astype(jnp.float32)
    o_ref[...] = (x * scale_ref[...] + shift_ref[...]).astype(o_ref.dtype)


def _apply_affine(xr, scale, shift, tr, tc, vmem_limit):
    R, HW = xr.shape
    return pl.pallas_call(
        _apply_affine_kernel,
        out_shape=jax.ShapeDtypeStruct((R, HW), xr.dtype),
        grid_spec=pltpu.PrefetchScalarGridSpec(
            num_scalar_prefetch=0,
            grid=(pl.cdiv(R, tr), pl.cdiv(HW, tc)),
            in_specs=[pl.BlockSpec((tr, tc), lambda i, j: (i, j)),
                      pl.BlockSpec((tr, 1), lambda i, j: (i, 0)),
                      pl.BlockSpec((tr, 1), lambda i, j: (i, 0))],
            out_specs=pl.BlockSpec((tr, tc), lambda i, j: (i, j)),
        ),
        compiler_params=pltpu.CompilerParams(
            dimension_semantics=("parallel", "parallel"),
            vmem_limit_bytes=vmem_limit),
        cost_estimate=pl.CostEstimate(
            flops=2 * R * HW,
            transcendentals=0,
            bytes_accessed=2 * R * HW * xr.dtype.itemsize + 2 * R * 4),
    )(xr, scale, shift)


# ----------------------------------------------------------------------------
# BCNorm forward
# ----------------------------------------------------------------------------
@functools.partial(jax.jit, static_argnames=("num_groups", "eps"))
def bcnorm(x, bn_weight, bn_bias, gn_weight, gn_bias, *, num_groups=32,
           eps=1e-5):
    """BCNorm forward: train-mode BatchNorm2d followed by GroupNorm.

    x: [N, C, H, W]; affine params are per-channel [C] vectors.
    """
    N, C, H, W = x.shape
    assert C % num_groups == 0, "num_features must be divisible by num_groups"
    HW = H * W
    R = N * C
    xr = x.reshape(R, HW)

    vmem_limit, p1_bytes, p2_bytes = _hw_budgets()
    itemsize = xr.dtype.itemsize
    tr1, tc1 = _pick_tiles(R, HW, itemsize, p1_bytes)
    tr2, tc2 = _pick_tiles(R, HW, itemsize, p2_bytes)

    # ---- pass 1: per-(n,c) spatial sums ----
    s1, s2 = _row_stats(xr, tr1, tc1, vmem_limit)
    s1 = s1.reshape(N, C)
    s2 = s2.reshape(N, C)

    # ---- tiny [N, C] stat combining (plain jnp; negligible work) ----
    # NOTE: single-pass E[x^2]-E[x]^2 in f32; eps keeps rsqrt finite. For
    # extremely poorly-scaled inputs a shifted-sum variant would be safer.
    cnt_bn = N * HW
    mean_c = jnp.sum(s1, axis=0) / cnt_bn                      # [C]
    ex2_c = jnp.sum(s2, axis=0) / cnt_bn                       # [C]
    var_c = ex2_c - mean_c * mean_c                            # biased, as PyTorch
    a = bn_weight.astype(jnp.float32) * lax.rsqrt(var_c + eps)  # [C]
    b = bn_bias.astype(jnp.float32) - a * mean_c                # [C]

    # per-(n,c) moments of the BN output y = a*x + b over spatial
    ex = s1 / HW                                               # [N, C]
    ex2 = s2 / HW                                              # [N, C]
    ey = a[None, :] * ex + b[None, :]
    ey2 = (a * a)[None, :] * ex2 + 2.0 * (a * b)[None, :] * ex + (b * b)[None, :]

    gc = C // num_groups
    eyg = jnp.mean(ey.reshape(N, num_groups, gc), axis=2)      # [N, G]
    ey2g = jnp.mean(ey2.reshape(N, num_groups, gc), axis=2)    # [N, G]
    var_g = ey2g - eyg * eyg
    rstd_g = lax.rsqrt(var_g + eps)                            # [N, G]

    mu = jnp.repeat(eyg, gc, axis=1)                           # [N, C]
    rstd = jnp.repeat(rstd_g, gc, axis=1)                      # [N, C]
    g_gn = gn_weight.astype(jnp.float32)[None, :]
    b_gn = gn_bias.astype(jnp.float32)[None, :]

    scale = (a[None, :] * rstd * g_gn).reshape(R, 1)
    shift = ((b[None, :] - mu) * rstd * g_gn + b_gn).reshape(R, 1)

    # ---- pass 2: streaming affine apply ----
    out = _apply_affine(xr, scale, shift, tr2, tc2, vmem_limit)
    return out.reshape(N, C, H, W)


# ----------------------------------------------------------------------------
# Pure-JAX reference (mirrors the PyTorch module in train mode)
# ----------------------------------------------------------------------------
def _reference(x, bn_w, bn_b, gn_w, gn_b, *, num_groups, eps):
    N, C, H, W = x.shape
    xf = x.astype(jnp.float32)
    mean = xf.mean(axis=(0, 2, 3), keepdims=True)
    var = ((xf - mean) ** 2).mean(axis=(0, 2, 3), keepdims=True)
    y = (xf - mean) * lax.rsqrt(var + eps)
    y = y * bn_w.reshape(1, C, 1, 1) + bn_b.reshape(1, C, 1, 1)
    yg = y.reshape(N, num_groups, C // num_groups, H, W)
    mu = yg.mean(axis=(2, 3, 4), keepdims=True)
    vg = ((yg - mu) ** 2).mean(axis=(2, 3, 4), keepdims=True)
    z = (yg - mu) * lax.rsqrt(vg + eps)
    z = z.reshape(N, C, H, W) * gn_w.reshape(1, C, 1, 1) + gn_b.reshape(1, C, 1, 1)
    return z.astype(x.dtype)


if __name__ == "__main__":
    key = jax.random.PRNGKey(0)
    kx, kw1, kb1, kw2, kb2 = jax.random.split(key, 5)

    # num_features=64 with the module's default num_groups=32
    N, C, H, W = 2, 64, 16, 16
    G = 32
    EPS = 1e-5

    x = jax.random.normal(kx, (N, C, H, W), dtype=jnp.float32) * 2.0 + 0.5
    bn_w = jax.random.uniform(kw1, (C,), jnp.float32, minval=0.5, maxval=1.5)
    bn_b = jax.random.uniform(kb1, (C,), jnp.float32, minval=-0.5, maxval=0.5)
    gn_w = jax.random.uniform(kw2, (C,), jnp.float32, minval=0.5, maxval=1.5)
    gn_b = jax.random.uniform(kb2, (C,), jnp.float32, minval=-0.5, maxval=0.5)

    out = bcnorm(x, bn_w, bn_b, gn_w, gn_b, num_groups=G, eps=EPS)
    out = jax.block_until_ready(out)

    ref = _reference(x, bn_w, bn_b, gn_w, gn_b, num_groups=G, eps=EPS)
    assert out.shape == x.shape and out.dtype == x.dtype
    max_err = jnp.max(jnp.abs(out - ref))
    assert jnp.allclose(out, ref, atol=2e-4, rtol=2e-4), f"max err {max_err}"

    print("KERNEL_OK")
</pallas_src>

<mosaic_0001>
module attributes {stable_mosaic.version = 11 : i64} {
  func.func @_row_stats_kernel(%arg0: i32, %arg1: i32, %arg2: memref<64x256xf32, #tpu.memory_space<vmem>>, %arg3: memref<64x1xf32, #tpu.memory_space<vmem>>, %arg4: memref<64x1xf32, #tpu.memory_space<vmem>>) attributes {dimension_semantics = [#tpu.dimension_semantics<parallel>, #tpu.dimension_semantics<arbitrary>], iteration_bounds = array<i64: 2, 1>, scalar_prefetch = 0 : i64, scratch_operands = 0 : i64, tpu.core_type = #tpu.core_type<tc>, window_params = [{transform_indices = @transform_0, window_bounds = array<i64: 64, 256>}, {transform_indices = @transform_1, window_bounds = array<i64: 64, 1>}, {transform_indices = @transform_2, window_bounds = array<i64: 64, 1>}]} {
    %c0_i32 = arith.constant 0 : i32
    %0 = arith.cmpi eq, %arg1, %c0_i32 : i32
    %1 = arith.extui %0 : i1 to i32
    %c0_i32_0 = arith.constant 0 : i32
    %2 = arith.cmpi ne, %1, %c0_i32_0 : i32
    scf.if %2 {
      %cst_11 = arith.constant 0.000000e+00 : f32
      %15 = vector.broadcast %cst_11 : f32 to vector<64x1xf32>
      %c0_12 = arith.constant 0 : index
      %c0_13 = arith.constant 0 : index
      %16 = vector.load %arg3[%c0_12, %c0_13] : memref<64x1xf32, #tpu.memory_space<vmem>>, vector<64x1xf32>
      tpu.vector_store %arg3[%c0_12, %c0_13], %15 {strides = array<i32>} : memref<64x1xf32, #tpu.memory_space<vmem>>, vector<64x1xf32>,
      %cst_14 = arith.constant 0.000000e+00 : f32
      %17 = vector.broadcast %cst_14 : f32 to vector<64x1xf32>
      %c0_15 = arith.constant 0 : index
      %c0_16 = arith.constant 0 : index
      %18 = vector.load %arg4[%c0_15, %c0_16] : memref<64x1xf32, #tpu.memory_space<vmem>>, vector<64x1xf32>
      tpu.vector_store %arg4[%c0_15, %c0_16], %17 {strides = array<i32>} : memref<64x1xf32, #tpu.memory_space<vmem>>, vector<64x1xf32>,
    } else {
    }
    %c0 = arith.constant 0 : index
    %c0_1 = arith.constant 0 : index
    %3 = vector.load %arg2[%c0, %c0_1] : memref<64x256xf32, #tpu.memory_space<vmem>>, vector<64x256xf32>
    %c0_2 = arith.constant 0 : index
    %c0_3 = arith.constant 0 : index
    %4 = vector.load %arg3[%c0_2, %c0_3] : memref<64x1xf32, #tpu.memory_space<vmem>>, vector<64x1xf32>
    %cst = arith.constant dense<0.000000e+00> : vector<64xf32>
    %5 = vector.multi_reduction <add>, %3, %cst [1] : vector<64x256xf32> to vector<64xf32>
    %6 = vector.shape_cast %5 : vector<64xf32> to vector<64x1xf32>
    %7 = arith.addf %4, %6 : vector<64x1xf32>
    %c0_4 = arith.constant 0 : index
    %c0_5 = arith.constant 0 : index
    %8 = vector.load %arg3[%c0_4, %c0_5] : memref<64x1xf32, #tpu.memory_space<vmem>>, vector<64x1xf32>
    tpu.vector_store %arg3[%c0_4, %c0_5], %7 {strides = array<i32>} : memref<64x1xf32, #tpu.memory_space<vmem>>, vector<64x1xf32>,
    %c0_6 = arith.constant 0 : index
    %c0_7 = arith.constant 0 : index
    %9 = vector.load %arg4[%c0_6, %c0_7] : memref<64x1xf32, #tpu.memory_space<vmem>>, vector<64x1xf32>
    %10 = arith.mulf %3, %3 : vector<64x256xf32>
    %cst_8 = arith.constant dense<0.000000e+00> : vector<64xf32>
    %11 = vector.multi_reduction <add>, %10, %cst_8 [1] : vector<64x256xf32> to vector<64xf32>
    %12 = vector.shape_cast %11 : vector<64xf32> to vector<64x1xf32>
    %13 = arith.addf %9, %12 : vector<64x1xf32>
    %c0_9 = arith.constant 0 : index
    %c0_10 = arith.constant 0 : index
    %14 = vector.load %arg4[%c0_9, %c0_10] : memref<64x1xf32, #tpu.memory_space<vmem>>, vector<64x1xf32>
    tpu.vector_store %arg4[%c0_9, %c0_10], %13 {strides = array<i32>} : memref<64x1xf32, #tpu.memory_space<vmem>>, vector<64x1xf32>,
    return
  }
  func.func @transform_0(%arg0: i32, %arg1: i32) -> (i32, i32) {
    %c0_i32 = arith.constant 0 : i32
    return %arg0, %arg1 : i32, i32
  }
  func.func @transform_1(%arg0: i32, %arg1: i32) -> (i32, i32) {
    %c0_i32 = arith.constant 0 : i32
    %c0_i32_0 = arith.constant 0 : i32
    return %arg0, %c0_i32 : i32, i32
  }
  func.func @transform_2(%arg0: i32, %arg1: i32) -> (i32, i32) {
    %c0_i32 = arith.constant 0 : i32
    %c0_i32_0 = arith.constant 0 : i32
    return %arg0, %c0_i32 : i32, i32
  }
}

module attributes {stable_mosaic.version = 11 : i64} {
  func.func @_apply_affine_kernel(%arg0: i32, %arg1: i32, %arg2: memref<64x256xf32, #tpu.memory_space<vmem>>, %arg3: memref<64x1xf32, #tpu.memory_space<vmem>>, %arg4: memref<64x1xf32, #tpu.memory_space<vmem>>, %arg5: memref<64x256xf32, #tpu.memory_space<vmem>>) attributes {dimension_semantics = [#tpu.dimension_semantics<parallel>, #tpu.dimension_semantics<parallel>], iteration_bounds = array<i64: 2, 1>, scalar_prefetch = 0 : i64, scratch_operands = 0 : i64, tpu.core_type = #tpu.core_type<tc>, window_params = [{transform_indices = @transform_0, window_bounds = array<i64: 64, 256>}, {transform_indices = @transform_1, window_bounds = array<i64: 64, 1>}, {transform_indices = @transform_2, window_bounds = array<i64: 64, 1>}, {transform_indices = @transform_3, window_bounds = array<i64: 64, 256>}]} {
    %c0 = arith.constant 0 : index
    %c0_0 = arith.constant 0 : index
    %0 = vector.load %arg2[%c0, %c0_0] : memref<64x256xf32, #tpu.memory_space<vmem>>, vector<64x256xf32>
    %c0_1 = arith.constant 0 : index
    %c0_2 = arith.constant 0 : index
    %1 = vector.load %arg3[%c0_1, %c0_2] : memref<64x1xf32, #tpu.memory_space<vmem>>, vector<64x1xf32>
    %2 = vector.broadcast %1 : vector<64x1xf32> to vector<64x256xf32>
    %3 = arith.mulf %0, %2 : vector<64x256xf32>
    %c0_3 = arith.constant 0 : index
    %c0_4 = arith.constant 0 : index
    %4 = vector.load %arg4[%c0_3, %c0_4] : memref<64x1xf32, #tpu.memory_space<vmem>>, vector<64x1xf32>
    %5 = vector.broadcast %4 : vector<64x1xf32> to vector<64x256xf32>
    %6 = arith.addf %3, %5 : vector<64x256xf32>
    %c0_5 = arith.constant 0 : index
    %c0_6 = arith.constant 0 : index
    %7 = vector.load %arg5[%c0_5, %c0_6] : memref<64x256xf32, #tpu.memory_space<vmem>>, vector<64x256xf32>
    tpu.vector_store %arg5[%c0_5, %c0_6], %6 {strides = array<i32>} : memref<64x256xf32, #tpu.memory_space<vmem>>, vector<64x256xf32>,
    return
  }
  func.func @transform_0(%arg0: i32, %arg1: i32) -> (i32, i32) {
    %c0_i32 = arith.constant 0 : i32
    return %arg0, %arg1 : i32, i32
  }
  func.func @transform_1(%arg0: i32, %arg1: i32) -> (i32, i32) {
    %c0_i32 = arith.constant 0 : i32
    %c0_i32_0 = arith.constant 0 : i32
    return %arg0, %c0_i32 : i32, i32
  }
  func.func @transform_2(%arg0: i32, %arg1: i32) -> (i32, i32) {
    %c0_i32 = arith.constant 0 : i32
    %c0_i32_0 = arith.constant 0 : i32
    return %arg0, %c0_i32 : i32, i32
  }
  func.func @transform_3(%arg0: i32, %arg1: i32) -> (i32, i32) {
    %c0_i32 = arith.constant 0 : i32
    return %arg0, %arg1 : i32, i32
  }
}

</mosaic_0001>

<bundles_post_ra>
// kernel: mul.53
= control target key start
LH: loop header
LB: loop body
LE: loop exit
PB: predicated region body
PF: predicated region fallthrough
CT: control target
= control target key end

     0   :  { %s34_s0 = inlined_call_operand.vmem [shape: f32[64], index: 0, kind: input, shape index: {}, may-alias: {0,1}]   ;;  %s35_s1 = inlined_call_operand.vmem [shape: f32[64], index: 1, kind: input, shape index: {}, may-alias: {0,1}]   ;;  %s36_s2 = inlined_call_operand.vmem [shape: f32[64], index: 2, kind: output, shape index: {}]  }
   0x1   :  { %v3_v0 = vld [vmem:[%s34_s0] sm:$0x1] }
   0x2   :  { %v4_v1 = vld [vmem:[%s35_s1] sm:$0x1] }
   0x3   :  { %v7_v2 = vmul.f32 %v4_v1, %v3_v0 }
   0x5   :  { %9 = vst [vmem:[%s36_s2] sm:$0x1] %v7_v2 }

// kernel: sub.6
= control target key start
LH: loop header
LB: loop body
LE: loop exit
PB: predicated region body
PF: predicated region fallthrough
CT: control target
= control target key end

     0   :  { %s34_s0 = inlined_call_operand.vmem [shape: f32[128,1], index: 0, kind: input, shape index: {}]   ;;  %s35_s1 = inlined_call_operand.vmem [shape: f32[128,1], index: 1, kind: input, shape index: {}]   ;;  %s36_s2 = inlined_call_operand.vmem [shape: f32[128,1], index: 2, kind: output, shape index: {}]  }
   0x1   :  { %v3_v0 = vld [vmem:[%s34_s0] sm:$0x1] }
   0x2   :  { %v4_v1 = vld [vmem:[%s35_s1] sm:$0x1] }
   0x3   :  { %v7_v2 = vsub.f32 %v3_v0, %v4_v1 }
   0x5   :  { %9 = vst [vmem:[%s36_s2] sm:$0x1] %v7_v2 }

// kernel: mul.68
= control target key start
LH: loop header
LB: loop body
LE: loop exit
PB: predicated region body
PF: predicated region fallthrough
CT: control target
= control target key end

     0   :  { %s34_s0 = inlined_call_operand.vmem [shape: f32[128,1], index: 0, kind: input, shape index: {}]   ;;  %s35_s1 = inlined_call_operand.vmem [shape: f32[128,1], index: 1, kind: input, shape index: {}]   ;;  %s36_s2 = inlined_call_operand.vmem [shape: f32[128,1], index: 2, kind: output, shape index: {}]  }
   0x1   :  { %v3_v0 = vld [vmem:[%s34_s0] sm:$0x1] }
   0x2   :  { %v4_v1 = vld [vmem:[%s35_s1] sm:$0x1] }
   0x3   :  { %v7_v2 = vmul.f32 %v4_v1, %v3_v0 }
   0x5   :  { %9 = vst [vmem:[%s36_s2] sm:$0x1] %v7_v2 }

// kernel: bcnorm.2
= control target key start
LH: loop header
LB: loop body
LE: loop exit
PB: predicated region body
PF: predicated region fallthrough
CT: control target
= control target key end

     0   :  { %s527_s9 = smov 0   ;;  %s529_s10 = smov 0   ;;  %s665_s0 = inlined_call_operand.vmem [shape: f32[128,256], index: 0, kind: input, shape index: {}]   ;;  %s666_s1 = inlined_call_operand.vmem [shape: f32[128,1], index: 1, kind: output, shape index: {0}]   ;;  %s667_s2 = inlined_call_operand.vmem [shape: f32[128,1], index: 2, kind: output, shape index: {1}]  }
   0x1   :  { %s531_s11 = smov 0  }
   0x2 LB: > { %s25_s12 = sadd.s32 1, %s505_s10  ;;  %p451_p0 = scmp.ge.s32.totalorder %s509_s11, 1  ;;  %s509_s11 = sphi %s531_s11, %s13_s11   ;;  %s505_s10 = sphi %s529_s10, %s669_s10   ;;  %s501_s9 = sphi %s527_s9, %s668_s9  }
   0x3   : > { %p27_p1 = scmp.ge.s32.totalorder %s25_s12, 2  ;;  %p136_p2 = scmp.lt.s32.totalorder %s509_s11, 3 }
   0x5   : > { %s671_s12 = smov (%p27_p1, %s25_s12), 0  ;;  %p137_p3 = pnand %p451_p0, %p136_p2 }
   0x6   : > { %s452_s13 = sshll.u32 (!%p137_p3), %s501_s9, 3 }
   0x7   : > { %140 = sbr.rel (%p137_p3) target bundleno = 188 (0xbc), region = 24  ;;  %p170_p4 = scmp.lt.s32.totalorder (!%p137_p3), %s452_s13, 15 }
   0xc   : > { %s673_s13 = smov (!%p170_p4, %s452_s13), 15  ;;  %vm196_vm0 = vcmask 7168   ;;  %v511_v3 = vmov 0.0  }
   0xd   : > { %s461_s14 = sshll.u32 %s673_s13, 4  ;;  %s456_s15 = sshll.u32 %s673_s13, 3 }
   0xe   : > { %s548_s18 = scalar_lea.vmem %s665_s0, %s461_s14  ;;  %s553_s21 = scalar_lea.vmem %s666_s1, %s456_s15 }
   0xf   : > { %s558_s24 = scalar_lea.vmem %s667_s2, %s456_s15  ;;  %v217_v0 = vld [vmem:[%s548_s18 + $0x20] sm:$0xff]  ;;  %v218_v1 = vld [vmem:[%s548_s18 + $0x28] sm:$0xff]  ;;  %199 = vst.msk [vmem:[%s553_s21 + $0x10] sm:$0xff] %vm196_vm0, %v511_v3  ;;  %197 = vst.msk [vmem:[%s553_s21] sm:$0xff] %vm196_vm0, %v511_v3 }
  0x10   : > { %v213_v2 = vld [vmem:[%s548_s18] sm:$0xff]  ;;  %198 = vst.msk [vmem:[%s553_s21 + $0x8] sm:$0xff] %vm196_vm0, %v511_v3  ;;  %200 = vst.msk [vmem:[%s553_s21 + $0x18] sm:$0xff] %vm196_vm0, %v511_v3  ;;  %v243_v4 = vadd.f32 %v218_v1, %v217_v0  ;;  %v214_v5 = vld [vmem:[%s548_s18 + $0x8] sm:$0xff]  ;;  %v290_v32 = vmul.f32 %v217_v0, %v217_v0  ;;  %v291_v33 = vmul.f32 %v218_v1, %v218_v1 }
  0x11   : > { %201 = vst.msk [vmem:[%s553_s21 + $0x20] sm:$0xff] %vm196_vm0, %v511_v3  ;;  %202 = vst.msk [vmem:[%s553_s21 + $0x28] sm:$0xff] %vm196_vm0, %v511_v3  ;;  %v219_v6 = vld [vmem:[%s548_s18 + $0x30] sm:$0xff]  ;;  %v220_v7 = vld [vmem:[%s548_s18 + $0x38] sm:$0xff]  ;;  %v237_v8 = vadd.f32 %v214_v5, %v213_v2  ;;  %v286_v26 = vmul.f32 %v213_v2, %v213_v2  ;;  %v287_v27 = vmul.f32 %v214_v5, %v214_v5 }
  0x12   : > { %203 = vst.msk [vmem:[%s553_s21 + $0x30] sm:$0xff] %vm196_vm0, %v511_v3  ;;  %204 = vst.msk [vmem:[%s553_s21 + $0x38] sm:$0xff] %vm196_vm0, %v511_v3  ;;  %v215_v9 = vld [vmem:[%s548_s18 + $0x10] sm:$0xff]  ;;  %v216_v10 = vld [vmem:[%s548_s18 + $0x18] sm:$0xff]  ;;  %244 = vadd.xlane.f32.xlu1 %v243_v4  ;;  %v246_v11 = vadd.f32 %v220_v7, %v219_v6  ;;  %v292_v30 = vmul.f32 %v219_v6, %v219_v6  ;;  %v293_v31 = vmul.f32 %v220_v7, %v220_v7 }
  0x13   : > { %205 = vst.msk [vmem:[%s558_s24] sm:$0xff] %vm196_vm0, %v511_v3  ;;  %206 = vst.msk [vmem:[%s558_s24 + $0x8] sm:$0xff] %vm196_vm0, %v511_v3  ;;  %238 = vadd.xlane.f32.xlu0 %v237_v8  ;;  %v240_v12 = vadd.f32 %v216_v10, %v215_v9  ;;  %v223_v13 = vld [vmem:[%s548_s18 + $0x50] sm:$0xff]  ;;  %v224_v14 = vld [vmem:[%s548_s18 + $0x58] sm:$0xff]  ;;  %v288_v24 = vmul.f32 %v215_v9, %v215_v9  ;;  %v289_v25 = vmul.f32 %v216_v10, %v216_v10 }
  0x14   : > { %207 = vst.msk [vmem:[%s558_s24 + $0x10] sm:$0xff] %vm196_vm0, %v511_v3  ;;  %208 = vst.msk [vmem:[%s558_s24 + $0x18] sm:$0xff] %vm196_vm0, %v511_v3  ;;  %v221_v15 = vld [vmem:[%s548_s18 + $0x40] sm:$0xff]  ;;  %v222_v16 = vld [vmem:[%s548_s18 + $0x48] sm:$0xff]  ;;  %v252_v17 = vadd.f32 %v224_v14, %v223_v13  ;;  %v302_v34 = vadd.f32 %v287_v27, %v286_v26  ;;  %v311_v35 = vadd.f32 %v293_v31, %v292_v30 }
  0x15   : > { %209 = vst.msk [vmem:[%s558_s24 + $0x20] sm:$0xff] %vm196_vm0, %v511_v3  ;;  %210 = vst.msk [vmem:[%s558_s24 + $0x28] sm:$0xff] %vm196_vm0, %v511_v3  ;;  %v249_v18 = vadd.f32 %v222_v16, %v221_v15  ;;  %v227_v19 = vld [vmem:[%s548_s18 + $0x70] sm:$0xff]  ;;  %v228_v20 = vld [vmem:[%s548_s18 + $0x78] sm:$0xff]  ;;  %v305_v29 = vadd.f32 %v289_v25, %v288_v24  ;;  %v296_v36 = vmul.f32 %v223_v13, %v223_v13 }
  0x16   : > { %211 = vst.msk [vmem:[%s558_s24 + $0x30] sm:$0xff] %vm196_vm0, %v511_v3  ;;  %212 = vst.msk [vmem:[%s558_s24 + $0x38] sm:$0xff] %vm196_vm0, %v511_v3  ;;  %247 = vadd.xlane.f32.xlu1 %v246_v11  ;;  %v225_v21 = vld [vmem:[%s548_s18 + $0x60] sm:$0xff]  ;;  %v226_v22 = vld [vmem:[%s548_s18 + $0x68] sm:$0xff]  ;;  %v258_v23 = vadd.f32 %v228_v20, %v227_v19  ;;  %v297_v37 = vmul.f32 %v224_v14, %v224_v14  ;;  %v308_v38 = vadd.f32 %v291_v33, %v290_v32 }
  0x17   : > { %241 = vadd.xlane.f32.xlu0 %v240_v12  ;;  %v255_v28 = vadd.f32 %v226_v22, %v225_v21  ;;  %v294_v39 = vmul.f32 %v221_v15, %v221_v15  ;;  %v295_v40 = vmul.f32 %v222_v16, %v222_v16  ;;  %v300_v42 = vmul.f32 %v227_v19, %v227_v19  ;;  %v231_v49 = vld [vmem:[%s553_s21 + $0x10] sm:$0xff]  ;;  %v229_v50 = vld [vmem:[%s553_s21] sm:$0xff]  ;;  %v232_v55 = vld [vmem:[%s553_s21 + $0x18] sm:$0xff] }
  0x18   : > { %v317_v41 = vadd.f32 %v297_v37, %v296_v36  ;;  %v301_v43 = vmul.f32 %v228_v20, %v228_v20  ;;  %v298_v45 = vmul.f32 %v225_v21, %v225_v21  ;;  %v299_v46 = vmul.f32 %v226_v22, %v226_v22  ;;  %v230_v56 = vld [vmem:[%s553_s21 + $0x8] sm:$0xff]  ;;  %v233_v62 = vld [vmem:[%s553_s21 + $0x20] sm:$0xff] }
  0x19   : > { %v314_v44 = vadd.f32 %v295_v40, %v294_v39  ;;  %v234_v61 = vld [vmem:[%s553_s21 + $0x28] sm:$0xff]  ;;  %v236_v3 = vld [vmem:[%s553_s21 + $0x38] sm:$0xff]  ;;  %v235_v4 = vld [vmem:[%s553_s21 + $0x30] sm:$0xff] }
  0x1a   : > { %253 = vadd.xlane.f32.xlu1 %v252_v17  ;;  %v323_v47 = vadd.f32 %v301_v43, %v300_v42  ;;  %v320_v48 = vadd.f32 %v299_v46, %v298_v45  ;;  %v279_v9 = vld [vmem:[%s558_s24 + $0x8] sm:$0xff]  ;;  %v278_v10 = vld [vmem:[%s558_s24] sm:$0xff] }
  0x1b   : > { %250 = vadd.xlane.f32.xlu0 %v249_v18  ;;  %v281_v15 = vld [vmem:[%s558_s24 + $0x18] sm:$0xff]  ;;  %v280_v16 = vld [vmem:[%s558_s24 + $0x10] sm:$0xff] }
  0x1c   : > { %v283_v21 = vld [vmem:[%s558_s24 + $0x28] sm:$0xff]  ;;  %v282_v22 = vld [vmem:[%s558_s24 + $0x20] sm:$0xff] }
  0x1d   : > { %v285_v27 = vld [vmem:[%s558_s24 + $0x38] sm:$0xff] }
  0x1e   : > { %259 = vadd.xlane.f32.xlu1 %v258_v23 }
  0x1f   : > { %256 = vadd.xlane.f32.xlu0 %v255_v28  ;;  %v284_v28 = vld [vmem:[%s558_s24 + $0x30] sm:$0xff] }
  0x22   : > { %306 = vadd.xlane.f32.xlu1 %v305_v29 }
  0x23   : > { %303 = vadd.xlane.f32.xlu0 %v302_v34 }
  0x26   : > { %312 = vadd.xlane.f32.xlu1 %v311_v35 }
  0x27   : > { %309 = vadd.xlane.f32.xlu0 %v308_v38 }
  0x2a   : > { %318 = vadd.xlane.f32.xlu1 %v317_v41 }
  0x2b   : > { %315 = vadd.xlane.f32.xlu0 %v314_v44 }
  0x2e   : > { %324 = vadd.xlane.f32.xlu1 %v323_v47 }
  0x2f   : > { %321 = vadd.xlane.f32.xlu0 %v320_v48 }
  0x9b   : > { %v245_v51 = vpop.xlane.xlu1 %244 }
  0x9c   : > { %v263_v52 = vadd.f32 %v245_v51, %v231_v49  ;;  %v239_v53 = vpop.xlane.xlu0 %238 }
  0x9d   : > { %v261_v54 = vadd.f32 %v239_v53, %v229_v50 }
  0x9e   : > { %272 = vst.msk [vmem:[%s553_s21 + $0x10] sm:$0xff] %vm196_vm0, %v263_v52 }
  0x9f   : > { %270 = vst.msk [vmem:[%s553_s21] sm:$0xff] %vm196_vm0, %v261_v54  ;;  %v248_v57 = vpop.xlane.xlu1 %247 }
  0xa0   : > { %v264_v58 = vadd.f32 %v248_v57, %v232_v55  ;;  %v242_v59 = vpop.xlane.xlu0 %241 }
  0xa1   : > { %v262_v60 = vadd.f32 %v242_v59, %v230_v56 }
  0xa2   : > { %273 = vst.msk [vmem:[%s553_s21 + $0x18] sm:$0xff] %vm196_vm0, %v264_v58 }
  0xa3   : > { %271 = vst.msk [vmem:[%s553_s21 + $0x8] sm:$0xff] %vm196_vm0, %v262_v60  ;;  %v254_v63 = vpop.xlane.xlu1 %253 }
  0xa4   : > { %v266_v0 = vadd.f32 %v254_v63, %v234_v61  ;;  %v251_v1 = vpop.xlane.xlu0 %250 }
  0xa5   : > { %v265_v2 = vadd.f32 %v251_v1, %v233_v62 }
  0xa6   : > { %275 = vst.msk [vmem:[%s553_s21 + $0x28] sm:$0xff] %vm196_vm0, %v266_v0 }
  0xa7   : > { %274 = vst.msk [vmem:[%s553_s21 + $0x20] sm:$0xff] %vm196_vm0, %v265_v2  ;;  %v260_v5 = vpop.xlane.xlu1 %259 }
  0xa8   : > { %v268_v6 = vadd.f32 %v260_v5, %v236_v3  ;;  %v257_v7 = vpop.xlane.xlu0 %256 }
  0xa9   : > { %v267_v8 = vadd.f32 %v257_v7, %v235_v4 }
  0xaa   : > { %277 = vst.msk [vmem:[%s553_s21 + $0x38] sm:$0xff] %vm196_vm0, %v268_v6 }
  0xab   : > { %276 = vst.msk [vmem:[%s553_s21 + $0x30] sm:$0xff] %vm196_vm0, %v267_v8  ;;  %v307_v11 = vpop.xlane.xlu1 %306 }
  0xac   : > { %v327_v12 = vadd.f32 %v307_v11, %v279_v9  ;;  %v304_v13 = vpop.xlane.xlu0 %303 }
  0xad   : > { %v326_v14 = vadd.f32 %v304_v13, %v278_v10 }
  0xae   : > { %335 = vst.msk [vmem:[%s558_s24 + $0x8] sm:$0xff] %vm196_vm0, %v327_v12 }
  0xaf   : > { %334 = vst.msk [vmem:[%s558_s24] sm:$0xff] %vm196_vm0, %v326_v14  ;;  %v313_v17 = vpop.xlane.xlu1 %312 }
  0xb0   : > { %v329_v18 = vadd.f32 %v313_v17, %v281_v15  ;;  %v310_v19 = vpop.xlane.xlu0 %309 }
  0xb1   : > { %v328_v20 = vadd.f32 %v310_v19, %v280_v16 }
  0xb2   : > { %337 = vst.msk [vmem:[%s558_s24 + $0x18] sm:$0xff] %vm196_vm0, %v329_v18 }
  0xb3   : > { %336 = vst.msk [vmem:[%s558_s24 + $0x10] sm:$0xff] %vm196_vm0, %v328_v20  ;;  %v319_v23 = vpop.xlane.xlu1 %318 }
  0xb4   : > { %v331_v24 = vadd.f32 %v319_v23, %v283_v21  ;;  %v316_v25 = vpop.xlane.xlu0 %315 }
  0xb5   : > { %v330_v26 = vadd.f32 %v316_v25, %v282_v22 }
  0xb6   : > { %339 = vst.msk [vmem:[%s558_s24 + $0x28] sm:$0xff] %vm196_vm0, %v331_v24 }
  0xb7   : > { %338 = vst.msk [vmem:[%s558_s24 + $0x20] sm:$0xff] %vm196_vm0, %v330_v26  ;;  %v325_v29 = vpop.xlane.xlu1 %324 }
  0xb8   : > { %v333_v30 = vadd.f32 %v325_v29, %v285_v27  ;;  %v322_v31 = vpop.xlane.xlu0 %321 }
  0xb9   : > { %v332_v32 = vadd.f32 %v322_v31, %v284_v28 }
  0xba   : > { %341 = vst.msk [vmem:[%s558_s24 + $0x38] sm:$0xff] %vm196_vm0, %v333_v30 }
  0xbb   : > { %340 = vst.msk [vmem:[%s558_s24 + $0x30] sm:$0xff] %vm196_vm0, %v332_v32 }
  0xbc PF: > { %s13_s11 = sadd.s32 1, %s509_s11   ;;  %s668_s9 = smov %s505_s10 }
  0xbd   : > { %p10_p5 = scmp.ge.s32.totalorder %s13_s11, 4   ;;  %s669_s10 = smov %s671_s12 }
  0xbf   :  { %12 = sbr.rel (!%p10_p5) target bundleno = 2 (0x2), region = 70 }

// kernel: bcnorm.3
= control target key start
LH: loop header
LB: loop body
LE: loop exit
PB: predicated region body
PF: predicated region fallthrough
CT: control target
= control target key end

     0   :  { %s627_s12 = smov 0   ;;  %s629_s13 = smov 0   ;;  %s706_s0 = inlined_call_operand.vmem [shape: f32[128,256], index: 0, kind: input, shape index: {}]   ;;  %s707_s1 = inlined_call_operand.vmem [shape: f32[128,1], index: 1, kind: input, shape index: {}]   ;;  %s708_s2 = inlined_call_operand.vmem [shape: f32[128,1], index: 2, kind: input, shape index: {}]   ;;  %s709_s3 = inlined_call_operand.vmem [shape: f32[128,256], index: 3, kind: output, shape index: {}]  }
   0x1   :  { %s631_s14 = smov 0  }
   0x2 LB: > { %s25_s15 = sadd.s32 1, %s600_s13  ;;  %p540_p0 = scmp.ge.s32.totalorder %s604_s14, 1  ;;  %s604_s14 = sphi %s631_s14, %s13_s14   ;;  %s600_s13 = sphi %s629_s13, %s711_s13   ;;  %s596_s12 = sphi %s627_s12, %s710_s12  }
   0x3   : > { %p27_p1 = scmp.ge.s32.totalorder %s25_s15, 2  ;;  %p182_p2 = scmp.lt.s32.totalorder %s604_s14, 3 }
   0x5   : > { %s713_s15 = smov (%p27_p1, %s25_s15), 0  ;;  %p183_p3 = pnand %p540_p0, %p182_p2 }
   0x6   : > { %s541_s16 = sshll.u32 (!%p183_p3), %s596_s12, 3 }
   0x7   : > { %186 = sbr.rel (%p183_p3) target bundleno = 172 (0xac), region = 32  ;;  %p228_p4 = scmp.lt.s32.totalorder (!%p183_p3), %s541_s16, 15 }
   0xc   : > { %v606_v0 = vmov 0   ;;  %s715_s16 = smov (!%p228_p4, %s541_s16), 15 }
   0xd   : > { %581 = vset.pattern.permute.xlu1 %v606_v0  ;;  %580 = vset.pattern.permute.xlu0 %v606_v0  ;;  %s545_s17 = sshll.u32 %s715_s16, 3  ;;  %s553_s24 = sshll.u32 %s715_s16, 4 }
   0xe   : > { %s242_s20 = scalar_lea.vmem %s707_s1, %s545_s17  ;;  %s248_s23 = scalar_lea.vmem %s708_s2, %s545_s17 }
   0xf   : > { %v280_v1 = vld [vmem:[%s242_s20 + $0x10] sm:$0xff]  ;;  %v278_v2 = vld [vmem:[%s242_s20] sm:$0xff]  ;;  %v281_v3 = vld [vmem:[%s242_s20 + $0x18] sm:$0xff]  ;;  %s658_s27 = scalar_lea.vmem %s706_s0, %s553_s24  ;;  %s668_s30 = scalar_lea.vmem %s709_s3, %s553_s24 }
  0x10   : > { %298 = vperm.xlu1 %581, %v280_v1   ;;  %288 = vperm.xlu0 %580, %v278_v2   ;;  %v279_v4 = vld [vmem:[%s242_s20 + $0x8] sm:$0xff]  ;;  %v282_v6 = vld [vmem:[%s242_s20 + $0x20] sm:$0xff]  ;;  %v285_v7 = vld [vmem:[%s242_s20 + $0x38] sm:$0xff] }
  0x11   : > { %v283_v5 = vld [vmem:[%s242_s20 + $0x28] sm:$0xff]  ;;  %v284_v8 = vld [vmem:[%s242_s20 + $0x30] sm:$0xff]  ;;  %v342_v10 = vld [vmem:[%s248_s23] sm:$0xff] }
  0x12   : > { %v343_v9 = vld [vmem:[%s248_s23 + $0x8] sm:$0xff]  ;;  %v345_v11 = vld [vmem:[%s248_s23 + $0x18] sm:$0xff]  ;;  %v344_v12 = vld [vmem:[%s248_s23 + $0x10] sm:$0xff] }
  0x13   : > { %v347_v13 = vld [vmem:[%s248_s23 + $0x28] sm:$0xff]  ;;  %v346_v14 = vld [vmem:[%s248_s23 + $0x20] sm:$0xff]  ;;  %v349_v15 = vld [vmem:[%s248_s23 + $0x38] sm:$0xff] }
  0x14   : > { %303 = vperm.xlu1 %581, %v281_v3   ;;  %293 = vperm.xlu0 %580, %v279_v4   ;;  %v348_v16 = vld [vmem:[%s248_s23 + $0x30] sm:$0xff]  ;;  %v262_v23 = vld [vmem:[%s658_s27] sm:$0xff]  ;;  %v263_v24 = vld [vmem:[%s658_s27 + $0x8] sm:$0xff] }
  0x15   : > { %v264_v25 = vld [vmem:[%s658_s27 + $0x10] sm:$0xff]  ;;  %v265_v26 = vld [vmem:[%s658_s27 + $0x18] sm:$0xff]  ;;  %v266_v29 = vld [vmem:[%s658_s27 + $0x20] sm:$0xff] }
  0x16   : > { %v267_v34 = vld [vmem:[%s658_s27 + $0x28] sm:$0xff]  ;;  %v268_v35 = vld [vmem:[%s658_s27 + $0x30] sm:$0xff]  ;;  %v269_v36 = vld [vmem:[%s658_s27 + $0x38] sm:$0xff] }
  0x17   : > { %v272_v47 = vld [vmem:[%s658_s27 + $0x50] sm:$0xff]  ;;  %v273_v48 = vld [vmem:[%s658_s27 + $0x58] sm:$0xff]  ;;  %v270_v49 = vld [vmem:[%s658_s27 + $0x40] sm:$0xff] }
  0x18   : > { %313 = vperm.xlu1 %581, %v283_v5   ;;  %308 = vperm.xlu0 %580, %v282_v6   ;;  %v271_v50 = vld [vmem:[%s658_s27 + $0x48] sm:$0xff]  ;;  %v276_v61 = vld [vmem:[%s658_s27 + $0x70] sm:$0xff]  ;;  %v277_v62 = vld [vmem:[%s658_s27 + $0x78] sm:$0xff] }
  0x19   : > { %v274_v63 = vld [vmem:[%s658_s27 + $0x60] sm:$0xff]  ;;  %v275_v0 = vld [vmem:[%s658_s27 + $0x68] sm:$0xff] }
  0x1c   : > { %323 = vperm.xlu1 %581, %v285_v7   ;;  %318 = vperm.xlu0 %580, %v284_v8  }
  0x20   : > { %357 = vperm.xlu1 %581, %v343_v9   ;;  %352 = vperm.xlu0 %580, %v342_v10  }
  0x24   : > { %367 = vperm.xlu1 %581, %v345_v11   ;;  %362 = vperm.xlu0 %580, %v344_v12  }
  0x28   : > { %377 = vperm.xlu1 %581, %v347_v13   ;;  %372 = vperm.xlu0 %580, %v346_v14  }
  0x2c   : > { %387 = vperm.xlu1 %581, %v349_v15   ;;  %382 = vperm.xlu0 %580, %v348_v16  }
  0x8b   : > { %v299_v17 = vpop.permute.xlu1 %298  ;;  %v289_v18 = vpop.permute.xlu0 %288 }
  0x8c   : > { %v326_v30 = vmul.f32 %v289_v18, %v262_v23  ;;  %v327_v31 = vmul.f32 %v289_v18, %v263_v24  ;;  %v330_v43 = vmul.f32 %v299_v17, %v266_v29  ;;  %v331_v44 = vmul.f32 %v299_v17, %v267_v34 }
  0x8f   : > { %v304_v19 = vpop.permute.xlu1 %303  ;;  %v294_v20 = vpop.permute.xlu0 %293 }
  0x90   : > { %v328_v32 = vmul.f32 %v294_v20, %v264_v25  ;;  %v329_v33 = vmul.f32 %v294_v20, %v265_v26  ;;  %v332_v45 = vmul.f32 %v304_v19, %v268_v35  ;;  %v333_v46 = vmul.f32 %v304_v19, %v269_v36 }
  0x93   : > { %v314_v21 = vpop.permute.xlu1 %313  ;;  %v309_v22 = vpop.permute.xlu0 %308 }
  0x94   : > { %v336_v57 = vmul.f32 %v314_v21, %v272_v47  ;;  %v337_v58 = vmul.f32 %v314_v21, %v273_v48  ;;  %v334_v59 = vmul.f32 %v309_v22, %v270_v49  ;;  %v335_v60 = vmul.f32 %v309_v22, %v271_v50 }
  0x97   : > { %v324_v27 = vpop.permute.xlu1 %323  ;;  %v319_v28 = vpop.permute.xlu0 %318 }
  0x98   : > { %v340_v7 = vmul.f32 %v324_v27, %v276_v61  ;;  %v341_v8 = vmul.f32 %v324_v27, %v277_v62  ;;  %v338_v9 = vmul.f32 %v319_v28, %v274_v63  ;;  %v339_v10 = vmul.f32 %v319_v28, %v275_v0 }
  0x9b   : > { %v358_v37 = vpop.permute.xlu1 %357  ;;  %v353_v38 = vpop.permute.xlu0 %352 }
  0x9c   : > { %v392_v39 = vadd.f32 %v358_v37, %v328_v32  ;;  %v393_v40 = vadd.f32 %v358_v37, %v329_v33  ;;  %v390_v41 = vadd.f32 %v353_v38, %v326_v30  ;;  %v391_v42 = vadd.f32 %v353_v38, %v327_v31 }
  0x9e   : > { %408 = vst [vmem:[%s668_s30 + $0x10] sm:$0xff] %v392_v39  ;;  %409 = vst [vmem:[%s668_s30 + $0x18] sm:$0xff] %v393_v40 }
  0x9f   : > { %406 = vst [vmem:[%s668_s30] sm:$0xff] %v390_v41  ;;  %407 = vst [vmem:[%s668_s30 + $0x8] sm:$0xff] %v391_v42  ;;  %v368_v51 = vpop.permute.xlu1 %367  ;;  %v363_v52 = vpop.permute.xlu0 %362 }
  0xa0   : > { %v396_v53 = vadd.f32 %v368_v51, %v332_v45  ;;  %v397_v54 = vadd.f32 %v368_v51, %v333_v46  ;;  %v394_v55 = vadd.f32 %v363_v52, %v330_v43  ;;  %v395_v56 = vadd.f32 %v363_v52, %v331_v44 }
  0xa2   : > { %412 = vst [vmem:[%s668_s30 + $0x30] sm:$0xff] %v396_v53  ;;  %413 = vst [vmem:[%s668_s30 + $0x38] sm:$0xff] %v397_v54 }
  0xa3   : > { %410 = vst [vmem:[%s668_s30 + $0x20] sm:$0xff] %v394_v55  ;;  %411 = vst [vmem:[%s668_s30 + $0x28] sm:$0xff] %v395_v56  ;;  %v378_v1 = vpop.permute.xlu1 %377  ;;  %v373_v2 = vpop.permute.xlu0 %372 }
  0xa4   : > { %v400_v3 = vadd.f32 %v378_v1, %v336_v57  ;;  %v401_v4 = vadd.f32 %v378_v1, %v337_v58  ;;  %v398_v5 = vadd.f32 %v373_v2, %v334_v59  ;;  %v399_v6 = vadd.f32 %v373_v2, %v335_v60 }
  0xa6   : > { %416 = vst [vmem:[%s668_s30 + $0x50] sm:$0xff] %v400_v3  ;;  %417 = vst [vmem:[%s668_s30 + $0x58] sm:$0xff] %v401_v4 }
  0xa7   : > { %414 = vst [vmem:[%s668_s30 + $0x40] sm:$0xff] %v398_v5  ;;  %415 = vst [vmem:[%s668_s30 + $0x48] sm:$0xff] %v399_v6  ;;  %v388_v11 = vpop.permute.xlu1 %387  ;;  %v383_v12 = vpop.permute.xlu0 %382 }
  0xa8   : > { %v404_v13 = vadd.f32 %v388_v11, %v340_v7  ;;  %v405_v14 = vadd.f32 %v388_v11, %v341_v8  ;;  %v402_v15 = vadd.f32 %v383_v12, %v338_v9  ;;  %v403_v16 = vadd.f32 %v383_v12, %v339_v10 }
  0xaa   : > { %420 = vst [vmem:[%s668_s30 + $0x70] sm:$0xff] %v404_v13  ;;  %421 = vst [vmem:[%s668_s30 + $0x78] sm:$0xff] %v405_v14 }
  0xab   : > { %418 = vst [vmem:[%s668_s30 + $0x60] sm:$0xff] %v402_v15  ;;  %419 = vst [vmem:[%s668_s30 + $0x68] sm:$0xff] %v403_v16 }
  0xac PF: > { %s13_s14 = sadd.s32 1, %s604_s14   ;;  %s710_s12 = smov %s600_s13 }
  0xad   : > { %p10_p5 = scmp.ge.s32.totalorder %s13_s14, 4   ;;  %s711_s13 = smov %s713_s15 }
  0xaf   :  { %12 = sbr.rel (!%p10_p5) target bundleno = 2 (0x2), region = 68 }

</bundles_post_ra>
